<compile_context>
chip_gen: v7x
topology: tpu7x:2x2x1
jax: 0.10.0
libtpu: 0.0.40
codegen_flags: <defaults>
</compile_context>

<pallas_src>
import functools
import math

import jax
import jax.numpy as jnp
import numpy as np
from jax.experimental import pallas as pl
from jax.experimental.pallas import tpu as pltpu


# ---------------------------------------------------------------------------
# Kernels
# ---------------------------------------------------------------------------

def _conv_down_kernel(*refs, wo, has_halo):
    """Stride-2 3x3 conv tile, expressed over the space-to-depth input.

    zc_ref   : (1, TH*Wo, 4*Cin)   current tile of flattened output rows
    zp_ref   : (1, Wo,    4*Cin)   halo = spatial row above this tile (if has_halo)
    cmask_ref: (TH*Wo, 1)          0 where the output column is 0 (left padding)
    w_ref    : (2, 4*Cin, 2*Coutp) w_ref[qa] = [Keff[qa, qb=0] | Keff[qa, qb=1]]
    b_ref    : (1, Coutp)
    o_ref    : (1, TH*Wo, Coutp)
    """
    if has_halo:
        zc_ref, zp_ref, cmask_ref, w_ref, b_ref, o_ref = refs
    else:
        zc_ref, cmask_ref, w_ref, b_ref, o_ref = refs

    thw = zc_ref.shape[1]
    coutp = o_ref.shape[2]

    zc = zc_ref[0]                                       # (THW, 4Cin), bf16

    if has_halo:
        t = pl.program_id(1)
        # The first tile's halo is the conv's zero top padding.
        halo_scale = (t > 0).astype(zc.dtype)
        zp = zp_ref[0] * halo_scale                      # (Wo, 4Cin)
    else:
        zp = jnp.zeros((wo, zc.shape[1]), zc.dtype)

    # Source for the qa=0 row taps: every output row reads the spatial row above.
    if thw > wo:
        z_up = jnp.concatenate([zp, zc[: thw - wo]], axis=0)   # (THW, 4Cin)
    else:
        z_up = zp

    # Two contiguous MXU matmuls (bf16 x bf16 -> f32), no shifted patch copies.
    s1 = jnp.dot(zc, w_ref[1], preferred_element_type=jnp.float32)
    s0 = jnp.dot(z_up, w_ref[0], preferred_element_type=jnp.float32)
    tsum = s0 + s1                                       # (THW, 2*Coutp)

    # Column taps: qb=1 half lands on the same output column; qb=0 half on the
    # next one (shift down one flattened position, zero the j==0 column).
    hi = tsum[:, coutp:]
    lo = tsum[:, :coutp]
    lo = jnp.concatenate(
        [jnp.zeros((1, coutp), jnp.float32), lo[: thw - 1]], axis=0)
    lo = lo * cmask_ref[...]

    o_ref[0] = (hi + lo + b_ref[...]).astype(o_ref.dtype)


def _pool_down_kernel(z_ref, o_ref):
    """Exact 2x2 average pool on the VPU (no MXU, no weights).

    z_ref: (1, 4, TH*Wo, C)  axis 1 enumerates the 2x2 window (pa, pb)
    o_ref: (1, TH*Wo, C)
    """
    acc = (z_ref[0, 0] + z_ref[0, 1]) + (z_ref[0, 2] + z_ref[0, 3])
    o_ref[0] = acc * 0.25


# ---------------------------------------------------------------------------
# Tiling / wrappers
# ---------------------------------------------------------------------------

def _pick_tile_rows(ho, wo, bytes_per_row, max_rows=None, budget=12 << 20):
    """Largest divisor of Ho whose per-step footprint fits `budget` and keeps
    the flattened sublane dim (TH*Wo) 8-aligned (unless it is the full image)."""
    th = max(1, min(ho, budget // max(bytes_per_row, 1)))
    if max_rows is not None:
        th = min(th, max_rows)
    th = int(th)
    while th > 1 and (ho % th or (th * wo) % 8):
        th -= 1
    if ho % th or (th != ho and (th * wo) % 8):
        th = ho                       # fall back to one tile per image
    return th


@functools.partial(jax.jit, static_argnames=("cout", "tile_rows"))
def downsample2d_conv(x, wcat, bias_p, *, cout, tile_rows=None):
    """x: (N, Cin, H, W) f32, wcat: (2, 4Cin, 2Coutp) f32, bias_p: (1, Coutp) f32
    -> (N, cout, H//2, W//2) f32."""
    n, cin, h, w = x.shape
    assert h % 2 == 0 and w % 2 == 0, "even spatial dims expected"
    ho, wo = h // 2, w // 2
    lane_in = 4 * cin
    coutp = wcat.shape[-1] // 2

    # Single HBM pass: NCHW -> space-to-depth, rows flattened, bf16.
    z = x.astype(jnp.bfloat16).reshape(n, cin, ho, 2, wo, 2)
    z = jnp.transpose(z, (0, 2, 4, 3, 5, 1)).reshape(n, ho * wo, lane_in)

    wcat_b = wcat.astype(jnp.bfloat16)

    per_row = wo * (6 * lane_in + 48 * coutp)       # rough VMEM bytes / output row
    th = _pick_tile_rows(ho, wo, per_row, tile_rows)
    nt = ho // th
    thw = th * wo
    has_halo = nt > 1

    # 0/1 column mask: zero where the output column is 0 (the conv's left pad).
    cmask = jnp.tile(
        jnp.concatenate([jnp.zeros((1, 1), jnp.float32),
                         jnp.ones((wo - 1, 1), jnp.float32)], axis=0),
        (th, 1))

    kernel = functools.partial(_conv_down_kernel, wo=wo, has_halo=has_halo)

    in_specs = [pl.BlockSpec((1, thw, lane_in), lambda b, t: (b, t, 0))]
    args = [z]
    if has_halo:
        in_specs.append(
            pl.BlockSpec((1, wo, lane_in),
                         lambda b, t: (b, jnp.maximum(t * th - 1, 0), 0)))
        args.append(z)
    in_specs += [
        pl.BlockSpec((thw, 1), lambda b, t: (0, 0)),
        pl.BlockSpec((2, lane_in, 2 * coutp), lambda b, t: (0, 0, 0)),
        pl.BlockSpec((1, coutp), lambda b, t: (0, 0)),
    ]
    args += [cmask, wcat_b, bias_p]

    out = pl.pallas_call(
        kernel,
        out_shape=jax.ShapeDtypeStruct((n, ho * wo, coutp), jnp.float32),
        grid_spec=pltpu.PrefetchScalarGridSpec(
            num_scalar_prefetch=0,
            grid=(n, nt),
            in_specs=in_specs,
            out_specs=pl.BlockSpec((1, thw, coutp), lambda b, t: (b, t, 0)),
        ),
        compiler_params=pltpu.CompilerParams(
            dimension_semantics=("parallel", "parallel"),
            vmem_limit_bytes=48 * 1024 * 1024),
    )(*args)

    out = out.reshape(n, ho, wo, coutp)[:, :, :, :cout]
    return jnp.transpose(out, (0, 3, 1, 2))


@jax.jit
def downsample2d_pool(x):
    """x: (N, C, H, W) f32 -> (N, C, H//2, W//2) f32  (exact 2x2 average pool)."""
    n, c, h, w = x.shape
    assert h % 2 == 0 and w % 2 == 0, "even spatial dims expected"
    ho, wo = h // 2, w // 2

    # Single HBM pass: NCHW -> (N, 4, Ho*Wo, C); axis 1 enumerates the 2x2 window.
    z = x.reshape(n, c, ho, 2, wo, 2)
    z = jnp.transpose(z, (0, 3, 5, 2, 4, 1)).reshape(n, 4, ho * wo, c)

    per_row = wo * c * 4 * 12
    th = _pick_tile_rows(ho, wo, per_row)
    nt = ho // th
    thw = th * wo

    out = pl.pallas_call(
        _pool_down_kernel,
        out_shape=jax.ShapeDtypeStruct((n, ho * wo, c), jnp.float32),
        grid_spec=pltpu.PrefetchScalarGridSpec(
            num_scalar_prefetch=0,
            grid=(n, nt),
            in_specs=[pl.BlockSpec((1, 4, thw, c), lambda b, t: (b, 0, t, 0))],
            out_specs=pl.BlockSpec((1, thw, c), lambda b, t: (b, t, 0)),
        ),
        compiler_params=pltpu.CompilerParams(
            dimension_semantics=("parallel", "parallel"),
            vmem_limit_bytes=48 * 1024 * 1024),
    )(z)

    return jnp.transpose(out.reshape(n, ho, wo, c), (0, 3, 1, 2))


# ---------------------------------------------------------------------------
# Parameters / weight folding
# ---------------------------------------------------------------------------

# _A[qa][pa] = original 3x3 tap index feeding (block-row shift qa, parity pa); -1 = none.
_A = ((-1, 0), (1, 2))


def fold_conv_weights(weight, coutp):
    """PyTorch OIHW (Cout, Cin, 3, 3) -> (2, 4*Cin, 2*Coutp) effective 2x2 weights
    over the space-to-depth input.  Lane order of the 4*Cin axis is (pa, pb, cin);
    the 2*Coutp axis is [qb=0 half | qb=1 half], each lane-padded to Coutp."""
    cout, cin = int(weight.shape[0]), int(weight.shape[1])
    w = jnp.transpose(weight, (2, 3, 1, 0)).astype(jnp.float32)   # (3, 3, Cin, Cout)
    per_qa = []
    for qa in range(2):
        halves = []
        for qb in range(2):
            k = jnp.zeros((2, 2, cin, coutp), jnp.float32)
            for pa in range(2):
                a = _A[qa][pa]
                if a < 0:
                    continue
                for pb in range(2):
                    b = _A[qb][pb]
                    if b < 0:
                        continue
                    k = k.at[pa, pb, :, :cout].set(w[a, b])
            halves.append(k.reshape(4 * cin, coutp))
        per_qa.append(jnp.concatenate(halves, axis=-1))            # (4Cin, 2*Coutp)
    return jnp.stack(per_qa, axis=0)                               # (2, 4Cin, 2*Coutp)


def make_downsample_params(channels, use_conv, out_channels=None, key=None):
    out_channels = out_channels or channels
    if not use_conv:
        assert out_channels == channels
        return None, None
    k1, k2 = jax.random.split(key)
    fan_in = channels * 9
    bound = 1.0 / math.sqrt(fan_in)
    weight = jax.random.uniform(k1, (out_channels, channels, 3, 3),
                                jnp.float32, -bound, bound)
    bias = jax.random.uniform(k2, (out_channels,), jnp.float32, -bound, bound)
    return weight, bias


def downsample(x, use_conv, weight=None, bias=None, tile_rows=None):
    """Forward pass of Downsample (dims=2)."""
    if not use_conv:
        return downsample2d_pool(x)
    cout = int(weight.shape[0])
    coutp = ((cout + 127) // 128) * 128          # lane-dense output stores
    wcat = fold_conv_weights(weight, coutp)
    bias_p = jnp.zeros((1, coutp), jnp.float32).at[0, :cout].set(
        bias.astype(jnp.float32))
    return downsample2d_conv(x, wcat, bias_p, cout=cout, tile_rows=tile_rows)


# ---------------------------------------------------------------------------
# Pure-JAX reference
# ---------------------------------------------------------------------------

def downsample_ref(x, weight, bias, use_conv):
    if not use_conv:
        n, c, h, w = x.shape
        return x.reshape(n, c, h // 2, 2, w // 2, 2).mean(axis=(3, 5))
    y = jax.lax.conv_general_dilated(
        x, weight, window_strides=(2, 2), padding=((1, 1), (1, 1)),
        dimension_numbers=("NCHW", "OIHW", "NCHW"),
        precision=jax.lax.Precision.HIGHEST)
    return y + bias[None, :, None, None]


if __name__ == "__main__":
    key = jax.random.PRNGKey(0)
    kx, kp, kx2, kp2 = jax.random.split(key, 4)

    # Case 1: use_conv=True, out_channels != channels (single spatial tile).
    n, c, h, w = 2, 4, 16, 16
    cout = 8
    x = jax.random.normal(kx, (n, c, h, w), dtype=jnp.float32)
    weight, bias = make_downsample_params(c, True, out_channels=cout, key=kp)
    y = jax.block_until_ready(downsample(x, True, weight, bias))
    y_ref = downsample_ref(x, weight, bias, True)
    assert y.shape == (n, cout, h // 2, w // 2)
    # bf16 inputs/weights with f32 accumulation -> 2e-2 tolerance.
    np.testing.assert_allclose(np.asarray(y), np.asarray(y_ref),
                               atol=2e-2, rtol=2e-2)

    # Case 2: use_conv=False (exact f32 VPU average pool).
    y_pool = jax.block_until_ready(downsample(x, False))
    y_pool_ref = downsample_ref(x, None, None, False)
    assert y_pool.shape == (n, c, h // 2, w // 2)
    np.testing.assert_allclose(np.asarray(y_pool), np.asarray(y_pool_ref),
                               atol=1e-5, rtol=1e-5)

    # Case 3: use_conv=True with forced spatial tiling (exercises the halo path).
    n3, c3, h3, w3, cout3 = 1, 8, 32, 32, 16
    x3 = jax.random.normal(kx2, (n3, c3, h3, w3), dtype=jnp.float32)
    weight3, bias3 = make_downsample_params(c3, True, out_channels=cout3, key=kp2)
    y3 = jax.block_until_ready(downsample(x3, True, weight3, bias3, tile_rows=4))
    y3_ref = downsample_ref(x3, weight3, bias3, True)
    assert y3.shape == (n3, cout3, h3 // 2, w3 // 2)
    np.testing.assert_allclose(np.asarray(y3), np.asarray(y3_ref),
                               atol=2e-2, rtol=2e-2)

    print("KERNEL_OK")
</pallas_src>

<mosaic_0001>
module attributes {stable_mosaic.version = 11 : i64} {
  func.func @_conv_down_kernel(%arg0: i32, %arg1: i32, %arg2: memref<1x64x16xbf16, #tpu.memory_space<vmem>>, %arg3: memref<64x1xf32, #tpu.memory_space<vmem>>, %arg4: memref<2x16x256xbf16, #tpu.memory_space<vmem>>, %arg5: memref<1x128xf32, #tpu.memory_space<vmem>>, %arg6: memref<1x64x128xf32, #tpu.memory_space<vmem>>) attributes {dimension_semantics = [#tpu.dimension_semantics<parallel>, #tpu.dimension_semantics<parallel>], iteration_bounds = array<i64: 2, 1>, scalar_prefetch = 0 : i64, scratch_operands = 0 : i64, tpu.core_type = #tpu.core_type<tc>, window_params = [{transform_indices = @transform_0, window_bounds = array<i64: 1, 64, 16>}, {pipeline_mode = #tpu.pipeline_mode<synchronous>, transform_indices = @transform_1, window_bounds = array<i64: 64, 1>}, {pipeline_mode = #tpu.pipeline_mode<synchronous>, transform_indices = @transform_2, window_bounds = array<i64: 2, 16, 256>}, {pipeline_mode = #tpu.pipeline_mode<synchronous>, transform_indices = @transform_3, window_bounds = array<i64: 1, 128>}, {transform_indices = @transform_4, window_bounds = array<i64: 1, 64, 128>}]} {
    %c0 = arith.constant 0 : index
    %c0_0 = arith.constant 0 : index
    %c0_1 = arith.constant 0 : index
    %0 = vector.load %arg2[%c0, %c0_0, %c0_1] : memref<1x64x16xbf16, #tpu.memory_space<vmem>>, vector<1x64x16xbf16>
    %1 = vector.shape_cast %0 : vector<1x64x16xbf16> to vector<64x16xbf16>
    %cst = arith.constant 0.000000e+00 : bf16
    %2 = vector.broadcast %cst : bf16 to vector<8x16xbf16>
    %3 = vector.extract_strided_slice %1 {offsets = [0, 0], sizes = [56, 16], strides = [1, 1]} : vector<64x16xbf16> to vector<56x16xbf16>
    %4 = tpu.concatenate %2, %3 in 0 : vector<8x16xbf16>, vector<56x16xbf16> -> vector<64x16xbf16>
    %c1 = arith.constant 1 : index
    %c0_2 = arith.constant 0 : index
    %c0_3 = arith.constant 0 : index
    %5 = vector.load %arg4[%c1, %c0_2, %c0_3] : memref<2x16x256xbf16, #tpu.memory_space<vmem>>, vector<1x16x256xbf16>
    %6 = vector.shape_cast %5 : vector<1x16x256xbf16> to vector<16x256xbf16>
    %cst_4 = arith.constant dense<0.000000e+00> : vector<64x256xf32>
    %7 = tpu.matmul %1, %6, %cst_4 {dimension_numbers = #tpu.dot_dimension_numbers<[1], [0], [0], [1], [0, 0, 1, 1], [], []>} : vector<64x16xbf16>, vector<16x256xbf16>, vector<64x256xf32> -> vector<64x256xf32>
    %c0_5 = arith.constant 0 : index
    %c0_6 = arith.constant 0 : index
    %c0_7 = arith.constant 0 : index
    %8 = vector.load %arg4[%c0_5, %c0_6, %c0_7] : memref<2x16x256xbf16, #tpu.memory_space<vmem>>, vector<1x16x256xbf16>
    %9 = vector.shape_cast %8 : vector<1x16x256xbf16> to vector<16x256xbf16>
    %cst_8 = arith.constant dense<0.000000e+00> : vector<64x256xf32>
    %10 = tpu.matmul %4, %9, %cst_8 {dimension_numbers = #tpu.dot_dimension_numbers<[1], [0], [0], [1], [0, 0, 1, 1], [], []>} : vector<64x16xbf16>, vector<16x256xbf16>, vector<64x256xf32> -> vector<64x256xf32>
    %11 = arith.addf %10, %7 : vector<64x256xf32>
    %12 = vector.extract_strided_slice %11 {offsets = [0, 128], sizes = [64, 128], strides = [1, 1]} : vector<64x256xf32> to vector<64x128xf32>
    %13 = vector.extract_strided_slice %11 {offsets = [0, 0], sizes = [64, 128], strides = [1, 1]} : vector<64x256xf32> to vector<64x128xf32>
    %cst_9 = arith.constant 0.000000e+00 : f32
    %14 = vector.broadcast %cst_9 : f32 to vector<1x128xf32>
    %15 = vector.extract_strided_slice %13 {offsets = [0, 0], sizes = [63, 128], strides = [1, 1]} : vector<64x128xf32> to vector<63x128xf32>
    %16 = tpu.concatenate %14, %15 in 0 : vector<1x128xf32>, vector<63x128xf32> -> vector<64x128xf32>
    %c0_10 = arith.constant 0 : index
    %c0_11 = arith.constant 0 : index
    %17 = vector.load %arg3[%c0_10, %c0_11] : memref<64x1xf32, #tpu.memory_space<vmem>>, vector<64x1xf32>
    %18 = vector.broadcast %17 : vector<64x1xf32> to vector<64x128xf32>
    %19 = arith.mulf %16, %18 : vector<64x128xf32>
    %20 = arith.addf %12, %19 : vector<64x128xf32>
    %c0_12 = arith.constant 0 : index
    %c0_13 = arith.constant 0 : index
    %21 = vector.load %arg5[%c0_12, %c0_13] : memref<1x128xf32, #tpu.memory_space<vmem>>, vector<1x128xf32>
    %22 = vector.broadcast %21 : vector<1x128xf32> to vector<64x128xf32>
    %23 = arith.addf %20, %22 : vector<64x128xf32>
    %c0_14 = arith.constant 0 : index
    %c0_15 = arith.constant 0 : index
    %c0_16 = arith.constant 0 : index
    %24 = vector.load %arg6[%c0_14, %c0_15, %c0_16] : memref<1x64x128xf32, #tpu.memory_space<vmem>>, vector<1x64x128xf32>
    %25 = vector.shape_cast %24 : vector<1x64x128xf32> to vector<64x128xf32>
    %26 = vector.shape_cast %23 : vector<64x128xf32> to vector<1x64x128xf32>
    tpu.vector_store %arg6[%c0_14, %c0_15, %c0_16], %26 {strides = array<i32>} : memref<1x64x128xf32, #tpu.memory_space<vmem>>, vector<1x64x128xf32>,
    return
  }
  func.func @transform_0(%arg0: i32, %arg1: i32) -> (i32, i32, i32) {
    %c0_i32 = arith.constant 0 : i32
    %c0_i32_0 = arith.constant 0 : i32
    return %arg0, %arg1, %c0_i32 : i32, i32, i32
  }
  func.func @transform_1(%arg0: i32, %arg1: i32) -> (i32, i32) {
    %c0_i32 = arith.constant 0 : i32
    %c0_i32_0 = arith.constant 0 : i32
    %c0_i32_1 = arith.constant 0 : i32
    return %c0_i32, %c0_i32_0 : i32, i32
  }
  func.func @transform_2(%arg0: i32, %arg1: i32) -> (i32, i32, i32) {
    %c0_i32 = arith.constant 0 : i32
    %c0_i32_0 = arith.constant 0 : i32
    %c0_i32_1 = arith.constant 0 : i32
    %c0_i32_2 = arith.constant 0 : i32
    return %c0_i32, %c0_i32_0, %c0_i32_1 : i32, i32, i32
  }
  func.func @transform_3(%arg0: i32, %arg1: i32) -> (i32, i32) {
    %c0_i32 = arith.constant 0 : i32
    %c0_i32_0 = arith.constant 0 : i32
    %c0_i32_1 = arith.constant 0 : i32
    return %c0_i32, %c0_i32_0 : i32, i32
  }
  func.func @transform_4(%arg0: i32, %arg1: i32) -> (i32, i32, i32) {
    %c0_i32 = arith.constant 0 : i32
    %c0_i32_0 = arith.constant 0 : i32
    return %arg0, %arg1, %c0_i32 : i32, i32, i32
  }
}

</mosaic_0001>

<bundles_post_ra>
// kernel: downsample2d_conv.1
= control target key start
LH: loop header
LB: loop body
LE: loop exit
PB: predicated region body
PF: predicated region fallthrough
CT: control target
= control target key end

     0   :  { %s819_s15 = smov 0   ;;  %s821_s16 = smov 0   ;;  %s941_s0 = inlined_call_operand.vmem [shape: bf16[2,64,16], index: 0, kind: input, shape index: {}]   ;;  %s942_s1 = inlined_call_operand.vmem [shape: f32[64,1], index: 1, kind: input, shape index: {}]   ;;  %s943_s2 = inlined_call_operand.vmem [shape: bf16[2,16,256], index: 2, kind: input, shape index: {}]   ;;  %s944_s3 = inlined_call_operand.vmem [shape: f32[1,128], index: 3, kind: input, shape index: {}]   ;;  %s945_s4 = inlined_call_operand.vmem [shape: f32[2,64,128], index: 4, kind: output, shape index: {}]  }
   0x1   :  { %s823_s17 = smov 0  }
   0x2 LB: > { %s26_s18 = sadd.s32 1, %s787_s16  ;;  %p680_p0 = scmp.ge.s32.totalorder %s791_s17, 1  ;;  %s791_s17 = sphi %s823_s17, %s14_s17   ;;  %s787_s16 = sphi %s821_s16, %s947_s16   ;;  %s783_s15 = sphi %s819_s15, %s946_s15  }
   0x3   : > { %p28_p1 = scmp.ge.s32.totalorder %s26_s18, 2  ;;  %p183_p2 = scmp.lt.s32.totalorder %s791_s17, 3 }
   0x5   : > { %s949_s18 = smov (%p28_p1, %s26_s18), 0  ;;  %p184_p3 = pnand %p680_p0, %p183_p2 }
   0x6   : > { %v755_v0 = vld [vmem:[%s943_s2 + $0x14] ss:$8 sps:$4 sm:$0xff] (!%p184_p3)   ;;  %p218_p4 = scmp.lt.s32.totalorder (!%p184_p3), %s783_s15, 1  ;;  %v757_v1 = vld [vmem:[%s943_s2 + $0x10] ss:$8 sps:$4 sm:$0xff] (!%p184_p3)   ;;  %v793_v2 = vmov (!%p184_p3), 0  }
   0x7   : > { %187 = sbr.rel (%p184_p3) target bundleno = 271 (0x10f), region = 36  ;;  %332 = vmatprep.mubr.bf16.mxu1 (!%p184_p3), %v793_v2  ;;  %428 = vmatprep.mubr.bf16.mxu0 (!%p184_p3), %v793_v2  ;;  %v758_v3 = vld [vmem:[%s943_s2 + $0x4] ss:$8 sps:$4 sm:$0xff] (!%p184_p3)   ;;  %v760_v4 = vld [vmem:[%s943_s2] ss:$8 sps:$4 sm:$0xff] (!%p184_p3)   ;;  %v504_v6 = vld [vmem:[%s942_s1 + $0x10] sm:$0xff] (!%p184_p3) }
   0x8   : > { %300 = vmatprep.subr.bf16.mxu1 (!%p184_p3), %v755_v0  ;;  %753 = vset.pattern.permute.xlu0 (!%p184_p3), %v793_v2  ;;  %v502_v5 = vld [vmem:[%s942_s1] sm:$0xff] (!%p184_p3)  ;;  %v503_v7 = vld [vmem:[%s942_s1 + $0x8] sm:$0xff] (!%p184_p3)  ;;  %vm287_vm0 = vcmask (!%p184_p3), 130048   ;;  %vm264_vm1 = vcmask (!%p184_p3), 1043456   ;;  %v505_v10 = vld [vmem:[%s942_s1 + $0x18] sm:$0xff] (!%p184_p3)  ;;  %vm477_vm2 = vcmask (!%p184_p3), 1040384  }
   0x9   : > { %301 = vmatpush1.bf16.msra.mxu1 (!%p184_p3), %v757_v1  ;;  %512 = vperm.xlu0 (!%p184_p3), %753, %v502_v5   ;;  %v506_v13 = vld [vmem:[%s942_s1 + $0x20] sm:$0xff] (!%p184_p3)  ;;  %v507_v17 = vld [vmem:[%s942_s1 + $0x28] sm:$0xff] (!%p184_p3)  ;;  %v508_v18 = vld [vmem:[%s942_s1 + $0x30] sm:$0xff] (!%p184_p3) }
   0xa   : > { %396 = vmatprep.subr.bf16.mxu0 (!%p184_p3), %v758_v3  ;;  %754 = vset.pattern.permute.xlu1 (!%p184_p3), %v793_v2  ;;  %v509_v21 = vld [vmem:[%s942_s1 + $0x38] sm:$0xff] (!%p184_p3)  ;;  %v902_v48 = vld [vmem:[%s944_s3] ss:$0 sm:$0xff] (!%p184_p3) }
   0xb   : > { %397 = vmatpush1.bf16.msra.mxu0 (!%p184_p3), %v760_v4  ;;  %522 = vperm.xlu1 (!%p184_p3), %754, %v504_v6  }
   0xd   : > { %517 = vperm.xlu0 (!%p184_p3), %753, %v503_v7  }
   0xe   : > { %s951_s15 = smov (!%p218_p4, %s783_s15), 1 }
   0xf   : > { %s710_s5 = sshll.u32 %s951_s15, 5  ;;  %527 = vperm.xlu1 %754, %v505_v10   ;;  %s711_s25 = sshll.u32 %s951_s15, 6 }
  0x10   : > { %s864_s10 = scalar_lea.vmem %s941_s0, %s710_s5  ;;  %s908_s30 = scalar_lea.vmem %s945_s4, %s711_s25 }
  0x11   : > { %v238_v8 = vld [vmem:[%s864_s10] sm:$0xf]  ;;  %v239_v9 = vld [vmem:[%s864_s10 + $0x4] sm:$0xf]  ;;  %v240_v15 = vld [vmem:[%s864_s10 + $0x8] sm:$0xf]  ;;  %532 = vperm.xlu0 %753, %v506_v13  }
  0x12   : > { %v691_v11 = vcombine.low %v238_v8, %v239_v9  ;;  %v685_v12 = vcombine.low %v238_v8, %v238_v8  ;;  %v241_v16 = vld [vmem:[%s864_s10 + $0xc] sm:$0xf]  ;;  %v686_v20 = vcombine.low %v239_v9, %v240_v15  ;;  %v242_v22 = vld [vmem:[%s864_s10 + $0x10] sm:$0xf]  ;;  %v243_v23 = vld [vmem:[%s864_s10 + $0x14] sm:$0xf] }
  0x13   : > { %v692_v19 = vcombine.low %v240_v15, %v241_v16  ;;  %537 = vperm.xlu1 %754, %v507_v17   ;;  %v693_v24 = vcombine.low %v242_v22, %v243_v23  ;;  %v687_v25 = vcombine.low %v241_v16, %v242_v22  ;;  %v244_v26 = vld [vmem:[%s864_s10 + $0x18] sm:$0xf]  ;;  %v245_v27 = vld [vmem:[%s864_s10 + $0x1c] sm:$0xf] }
  0x14   : > { %697 = vmatmul.mubr.msk.bf16.vlgmr.msra.gmra.mrb[0].mxu1 %vm287_vm0, %v691_v11  ;;  %v267_v14 = vsel %vm264_vm1, 0, %v685_v12  ;;  %v694_v28 = vcombine.low %v244_v26, %v245_v27  ;;  %v688_v29 = vcombine.low %v243_v23, %v244_v26 }
  0x15   : > { %703 = vmatmul.mubr.msk.bf16.vlgmr.msra.gmra.mrb[0].mxu0 %vm287_vm0, %v267_v14  ;;  %342 = vmatprep.mubr.bf16.mxu1 %v793_v2 }
  0x16   : > { %438 = vmatprep.mubr.bf16.mxu0 %v793_v2  ;;  %542 = vperm.xlu0 %753, %v508_v18  }
  0x17   : > { %547 = vperm.xlu1 %754, %v509_v21  }
  0x1c   : > { %698 = vmatmul.mubr.msk.bf16.gmra.mrb[4].mxu1 %vm287_vm0, %v692_v19 }
  0x1d   : > { %704 = vmatmul.mubr.msk.bf16.gmra.mrb[4].mxu0 %vm287_vm0, %v686_v20  ;;  %352 = vmatprep.mubr.bf16.mxu1 %v793_v2 }
  0x1e   : > { %448 = vmatprep.mubr.bf16.mxu0 %v793_v2 }
  0x24   : > { %699 = vmatmul.mubr.msk.bf16.gmra.mrb[8].mxu1 %vm287_vm0, %v693_v24 }
  0x25   : > { %705 = vmatmul.mubr.msk.bf16.gmra.mrb[8].mxu0 %vm287_vm0, %v687_v25  ;;  %362 = vmatprep.mubr.bf16.mxu1 %v793_v2 }
  0x26   : > { %458 = vmatprep.mubr.bf16.mxu0 %v793_v2 }
  0x2c   : > { %700 = vmatmul.mubr.msk.bf16.gmra.mrb[12].mxu1 %vm287_vm0, %v694_v28 }
  0x2d   : > { %706 = vmatmul.mubr.msk.bf16.gmra.mrb[12].mxu0 %vm287_vm0, %v688_v29 }
  0x88   : > { %v513_v31 = vpop.permute.xlu0 %512 }
  0x8a   : > { %v523_v49 = vpop.permute.xlu1 %522 }
  0x8c   : > { %v518_v46 = vpop.permute.xlu0 %517 }
  0x8e   : > { %v528_v8 = vpop.permute.xlu1 %527 }
  0x90   : > { %v533_v28 = vpop.permute.xlu0 %532 }
  0xe7   : > { %v334_v30 = vpop.f32.mrb[0].mxu1 }
  0xe8   : > { %v336_v32 = vpop.f32.mrb[1].mxu1  ;;  %v430_v33 = vpop.f32.mrb[0].mxu0 }
  0xe9   : > { %v431_v34 = vadd.f32 %v430_v33, %v334_v30  ;;  %v338_v35 = vpop.f32.mrb[2].mxu1  ;;  %v432_v36 = vpop.f32.mrb[1].mxu0 }
  0xea   : > { %v433_v37 = vadd.f32 %v432_v36, %v336_v32  ;;  %v340_v38 = vpop.f32.mrb[3].mxu1  ;;  %v434_v39 = vpop.f32.mrb[2].mxu0 }
  0xeb   : > { %v478_v40 = vrot.slane %v431_v34, 7  ;;  %v435_v41 = vadd.f32 %v434_v39, %v338_v35  ;;  %v436_v42 = vpop.f32.mrb[3].mxu0  ;;  %v538_v32 = vpop.permute.xlu1 %537 }
  0xec   : > { %v437_v43 = vadd.f32 %v436_v42, %v340_v38 }
  0xed   : > { %v479_v44 = vrot.slane %v435_v41, 7  ;;  %v501_v45 = vsel %vm477_vm2, 0.0, %v478_v40 }
  0xee   : > { %v550_v47 = vmul.f32 %v513_v31, %v501_v45 }
  0xef   : > { %v480_v50 = vsel %vm477_vm2, %v478_v40, %v479_v44  ;;  %v344_v51 = vpop.f32.mrb[4].mxu1 }
  0xf0   : > { %v558_v52 = vadd.f32 %v550_v47, %v433_v37  ;;  %v551_v53 = vmul.f32 %v518_v46, %v480_v50  ;;  %v346_v54 = vpop.f32.mrb[5].mxu1  ;;  %v440_v55 = vpop.f32.mrb[4].mxu0 }
  0xf1   : > { %v441_v56 = vadd.f32 %v440_v55, %v344_v51  ;;  %v348_v57 = vpop.f32.mrb[6].mxu1  ;;  %v442_v58 = vpop.f32.mrb[5].mxu0 }
  0xf2   : > { %v573_v59 = vadd.f32 %v902_v48, %v558_v52  ;;  %v559_v60 = vadd.f32 %v551_v53, %v437_v43  ;;  %v443_v61 = vadd.f32 %v442_v58, %v346_v54  ;;  %v350_v62 = vpop.f32.mrb[7].mxu1  ;;  %v444_v63 = vpop.f32.mrb[6].mxu0 }
  0xf3   : > { %v481_v0 = vrot.slane %v441_v56, 7  ;;  %v445_v1 = vadd.f32 %v444_v63, %v348_v57  ;;  %v446_v2 = vpop.f32.mrb[7].mxu0  ;;  %v543_v53 = vpop.permute.xlu0 %542 }
  0xf4   : > { %581 = vst [vmem:[%s908_s30] sm:$0xff] %v573_v59  ;;  %v574_v3 = vadd.f32 %v902_v48, %v559_v60  ;;  %v447_v4 = vadd.f32 %v446_v2, %v350_v62  ;;  %v548_v57 = vpop.permute.xlu1 %547 }
  0xf5   : > { %v482_v5 = vsel %vm477_vm2, %v479_v44, %v481_v0  ;;  %v483_v6 = vrot.slane %v445_v1, 7 }
  0xf6   : > { %582 = vst [vmem:[%s908_s30 + $0x8] sm:$0xff] %v574_v3  ;;  %v552_v7 = vmul.f32 %v523_v49, %v482_v5 }
  0xf7   : > { %v484_v9 = vsel %vm477_vm2, %v481_v0, %v483_v6  ;;  %v354_v10 = vpop.f32.mrb[8].mxu1 }
  0xf8   : > { %v560_v11 = vadd.f32 %v552_v7, %v443_v61  ;;  %v553_v12 = vmul.f32 %v528_v8, %v484_v9  ;;  %v356_v13 = vpop.f32.mrb[9].mxu1  ;;  %v450_v14 = vpop.f32.mrb[8].mxu0 }
  0xf9   : > { %v451_v15 = vadd.f32 %v450_v14, %v354_v10  ;;  %v358_v16 = vpop.f32.mrb[10].mxu1  ;;  %v452_v17 = vpop.f32.mrb[9].mxu0 }
  0xfa   : > { %v575_v18 = vadd.f32 %v902_v48, %v560_v11  ;;  %v561_v19 = vadd.f32 %v553_v12, %v447_v4  ;;  %v453_v20 = vadd.f32 %v452_v17, %v356_v13  ;;  %v360_v21 = vpop.f32.mrb[11].mxu1  ;;  %v454_v22 = vpop.f32.mrb[10].mxu0 }
  0xfb   : > { %v485_v23 = vrot.slane %v451_v15, 7  ;;  %v455_v24 = vadd.f32 %v454_v22, %v358_v16  ;;  %v456_v25 = vpop.f32.mrb[11].mxu0 }
  0xfc   : > { %583 = vst [vmem:[%s908_s30 + $0x10] sm:$0xff] %v575_v18  ;;  %v576_v26 = vadd.f32 %v902_v48, %v561_v19  ;;  %v457_v27 = vadd.f32 %v456_v25, %v360_v21 }
  0xfd   : > { %v486_v29 = vsel %vm477_vm2, %v483_v6, %v485_v23  ;;  %v487_v30 = vrot.slane %v455_v24, 7 }
  0xfe   : > { %584 = vst [vmem:[%s908_s30 + $0x18] sm:$0xff] %v576_v26  ;;  %v554_v31 = vmul.f32 %v533_v28, %v486_v29 }
  0xff   : > { %v488_v33 = vsel %vm477_vm2, %v485_v23, %v487_v30  ;;  %v364_v34 = vpop.f32.mrb[12].mxu1 }
 0x100   : > { %v562_v35 = vadd.f32 %v554_v31, %v453_v20  ;;  %v555_v36 = vmul.f32 %v538_v32, %v488_v33  ;;  %v366_v37 = vpop.f32.mrb[13].mxu1  ;;  %v460_v38 = vpop.f32.mrb[12].mxu0 }
 0x101   : > { %v461_v39 = vadd.f32 %v460_v38, %v364_v34  ;;  %v368_v40 = vpop.f32.mrb[14].mxu1  ;;  %v462_v41 = vpop.f32.mrb[13].mxu0 }
 0x102   : > { %v577_v42 = vadd.f32 %v902_v48, %v562_v35  ;;  %v563_v43 = vadd.f32 %v555_v36, %v457_v27  ;;  %v463_v44 = vadd.f32 %v462_v41, %v366_v37  ;;  %v370_v45 = vpop.f32.mrb[15].mxu1  ;;  %v464_v46 = vpop.f32.mrb[14].mxu0 }
 0x103   : > { %v489_v47 = vrot.slane %v461_v39, 7  ;;  %v465_v49 = vadd.f32 %v464_v46, %v368_v40  ;;  %v466_v50 = vpop.f32.mrb[15].mxu0 }
 0x104   : > { %585 = vst [vmem:[%s908_s30 + $0x20] sm:$0xff] %v577_v42  ;;  %v578_v51 = vadd.f32 %v902_v48, %v563_v43  ;;  %v467_v52 = vadd.f32 %v466_v50, %v370_v45 }
 0x105   : > { %v490_v54 = vsel %vm477_vm2, %v487_v30, %v489_v47  ;;  %v491_v55 = vrot.slane %v465_v49, 7 }
 0x106   : > { %586 = vst [vmem:[%s908_s30 + $0x28] sm:$0xff] %v578_v51  ;;  %v556_v56 = vmul.f32 %v543_v53, %v490_v54 }
 0x107   : > { %v492_v58 = vsel %vm477_vm2, %v489_v47, %v491_v55 }
 0x108   : > { %v564_v59 = vadd.f32 %v556_v56, %v463_v44  ;;  %v557_v60 = vmul.f32 %v548_v57, %v492_v58 }
 0x10a   : > { %v579_v61 = vadd.f32 %v902_v48, %v564_v59  ;;  %v565_v62 = vadd.f32 %v557_v60, %v467_v52 }
 0x10c   : > { %587 = vst [vmem:[%s908_s30 + $0x30] sm:$0xff] %v579_v61  ;;  %v580_v63 = vadd.f32 %v902_v48, %v565_v62 }
 0x10e   : > { %588 = vst [vmem:[%s908_s30 + $0x38] sm:$0xff] %v580_v63 }
 0x10f PF: > { %s14_s17 = sadd.s32 1, %s791_s17   ;;  %s946_s15 = smov %s787_s16 }
 0x110   : > { %p11_p5 = scmp.ge.s32.totalorder %s14_s17, 4   ;;  %s947_s16 = smov %s949_s18 }
 0x112   :  { %13 = sbr.rel (!%p11_p5) target bundleno = 2 (0x2), region = 67 }

</bundles_post_ra>
